<compile_context>
chip_gen: v7x
topology: tpu7x:2x2x1
jax: 0.10.0
libtpu: 0.0.40
codegen_flags: <defaults>
</compile_context>

<pallas_src>
import jax
import jax.numpy as jnp
from jax import lax
from jax.experimental import pallas as pl
from jax.experimental.pallas import tpu as pltpu


_NEG_BIG = -1e30  # padded-vocab bias: exp underflows to 0, no inf-inf NaNs


def _round_up(x, m):
    return ((x + m - 1) // m) * m


def _pad_to(a, shape, fill=0.0, dtype=None):
    if dtype is not None:
        a = a.astype(dtype)
    if tuple(a.shape) == tuple(shape):
        return a
    pad = [(0, t - s) for t, s in zip(shape, a.shape)]
    return jnp.pad(a, pad, constant_values=fill)


def _pad_bias(bias, v_pad):
    v = bias.shape[0]
    b = bias.astype(jnp.float32).reshape(1, v)
    if v_pad == v:
        return b
    return jnp.pad(b, ((0, 0), (0, v_pad - v)), constant_values=_NEG_BIG)


# ---------------------------------------------------------------------------
# Path 1: vocab resident in VMEM (small V).  grid = (M/TM, H/TK)
# ---------------------------------------------------------------------------
def _resident_kernel(x_ref, wt_ref, b_ref, o_ref):
    # x_ref : (TM, TK) bf16      activations
    # wt_ref: (TK, V)  bf16      weight already in (in, out) layout
    # b_ref : (1, V)   f32       bias (padded cols = -1e30)
    # o_ref : (TM, V)  f32       output; doubles as logits accumulator
    k = pl.program_id(1)

    @pl.when(k == 0)
    def _():
        o_ref[...] = jnp.broadcast_to(b_ref[...], o_ref.shape)

    o_ref[...] += lax.dot_general(
        x_ref[...], wt_ref[...],
        dimension_numbers=(((1,), (0,)), ((), ())),
        preferred_element_type=jnp.float32,
    )

    @pl.when(k == pl.num_programs(1) - 1)
    def _():
        logits = o_ref[...]
        m = jnp.max(logits, axis=-1, keepdims=True)
        shifted = logits - m
        lse = jnp.log(jnp.sum(jnp.exp(shifted), axis=-1, keepdims=True))
        o_ref[...] = shifted - lse


def _forward_resident(x_p, w_t, b2, *, TM, TK, vmem_bytes):
    M_pad, H_pad = x_p.shape
    V_pad = w_t.shape[1]
    n_m = M_pad // TM
    return pl.pallas_call(
        _resident_kernel,
        out_shape=jax.ShapeDtypeStruct((M_pad, V_pad), jnp.float32),
        grid=(n_m, H_pad // TK),
        in_specs=[
            pl.BlockSpec((TM, TK), lambda i, k: (i, k)),
            pl.BlockSpec((TK, V_pad), lambda i, k: (k, 0)),
            pl.BlockSpec((1, V_pad), lambda i, k: (0, 0)),
        ],
        out_specs=pl.BlockSpec((TM, V_pad), lambda i, k: (i, 0)),
        compiler_params=pltpu.CompilerParams(
            dimension_semantics=("parallel", "arbitrary"),
            vmem_limit_bytes=vmem_bytes,
        ),
        cost_estimate=pl.CostEstimate(
            flops=2 * M_pad * V_pad * H_pad,
            transcendentals=M_pad * V_pad,
            bytes_accessed=(x_p.size * 2 + w_t.size * 2 * n_m + M_pad * V_pad * 4),
        ),
    )(x_p, w_t, b2)


# ---------------------------------------------------------------------------
# Path 2: N-tiled vocab, online LSE + second normalization pass (large V / v7x)
# grid = (M/TM, V/TN, H/TK)
# ---------------------------------------------------------------------------
def _tiled_logits_kernel(x_ref, wt_ref, b_ref, logits_ref, lse_ref, m_ref, l_ref):
    # logits_ref: (TM, TN) f32 output tile, doubles as K accumulator
    # lse_ref   : (TM, 1)  f32 row log-sum-exp (written on the last (j,k))
    # m_ref/l_ref: (TM, 1) f32 running max / sum-exp scratch
    j = pl.program_id(1)
    k = pl.program_id(2)
    nj = pl.num_programs(1)
    nk = pl.num_programs(2)

    @pl.when(jnp.logical_and(j == 0, k == 0))
    def _():
        m_ref[...] = jnp.full_like(m_ref, -jnp.inf)
        l_ref[...] = jnp.zeros_like(l_ref)

    @pl.when(k == 0)
    def _():
        logits_ref[...] = jnp.broadcast_to(b_ref[...], logits_ref.shape)

    logits_ref[...] += lax.dot_general(
        x_ref[...], wt_ref[...],
        dimension_numbers=(((1,), (0,)), ((), ())),
        preferred_element_type=jnp.float32,
    )

    @pl.when(k == nk - 1)
    def _():
        tile = logits_ref[...]
        m_old = m_ref[...]
        m_new = jnp.maximum(m_old, jnp.max(tile, axis=-1, keepdims=True))
        l_ref[...] = (l_ref[...] * jnp.exp(m_old - m_new)
                      + jnp.sum(jnp.exp(tile - m_new), axis=-1, keepdims=True))
        m_ref[...] = m_new

        @pl.when(j == nj - 1)
        def _():
            lse_ref[...] = m_ref[...] + jnp.log(l_ref[...])


def _normalize_kernel(logits_ref, lse_ref, o_ref):
    o_ref[...] = logits_ref[...] - lse_ref[...]


def _forward_tiled(x_p, w_t, b2, *, TM, TN, TK, vmem_bytes):
    M_pad, H_pad = x_p.shape
    V_pad = w_t.shape[1]
    n_m, n_n, n_k = M_pad // TM, V_pad // TN, H_pad // TK

    logits, lse = pl.pallas_call(
        _tiled_logits_kernel,
        out_shape=(jax.ShapeDtypeStruct((M_pad, V_pad), jnp.float32),
                   jax.ShapeDtypeStruct((M_pad, 1), jnp.float32)),
        grid=(n_m, n_n, n_k),
        in_specs=[
            pl.BlockSpec((TM, TK), lambda i, j, k: (i, k)),
            pl.BlockSpec((TK, TN), lambda i, j, k: (k, j)),
            pl.BlockSpec((1, TN), lambda i, j, k: (0, j)),
        ],
        out_specs=(pl.BlockSpec((TM, TN), lambda i, j, k: (i, j)),
                   pl.BlockSpec((TM, 1), lambda i, j, k: (i, 0))),
        scratch_shapes=[pltpu.VMEM((TM, 1), jnp.float32),
                        pltpu.VMEM((TM, 1), jnp.float32)],
        compiler_params=pltpu.CompilerParams(
            dimension_semantics=("parallel", "arbitrary", "arbitrary"),
            vmem_limit_bytes=vmem_bytes,
        ),
        cost_estimate=pl.CostEstimate(
            flops=2 * M_pad * V_pad * H_pad,
            transcendentals=M_pad * V_pad,
            bytes_accessed=(x_p.size * 2 + w_t.size * 2 * n_m + M_pad * V_pad * 4),
        ),
    )(x_p, w_t, b2)

    out = pl.pallas_call(
        _normalize_kernel,
        out_shape=jax.ShapeDtypeStruct((M_pad, V_pad), jnp.float32),
        grid=(n_m, n_n),
        in_specs=[pl.BlockSpec((TM, TN), lambda i, j: (i, j)),
                  pl.BlockSpec((TM, 1), lambda i, j: (i, 0))],
        out_specs=pl.BlockSpec((TM, TN), lambda i, j: (i, j)),
        compiler_params=pltpu.CompilerParams(
            dimension_semantics=("parallel", "parallel"),
        ),
    )(logits, lse)
    return out


# ---------------------------------------------------------------------------
# Wrapper
# ---------------------------------------------------------------------------
def masked_log_model(x, weight, bias, *, compute_dtype=jnp.bfloat16,
                     force_tiled=False, vmem_budget_bytes=40 << 20):
    """LogSoftmax(x @ weight.T + bias, axis=-1).

    x:      (..., hidden)
    weight: (vocab, hidden)   -- PyTorch nn.Linear (out_features, in_features)
    bias:   (vocab,)
    returns (..., vocab) float32 log-probabilities
    """
    *lead, H = x.shape
    V, H_w = weight.shape
    assert H == H_w, "hidden size mismatch"
    x2 = x.reshape(-1, H)
    M = x2.shape[0]

    # hidden (contraction) tiling: full block if modest, else 512-wide K tiles.
    if H <= 1024:
        TK, H_pad = H, H
    else:
        TK = 512
        H_pad = _round_up(H, TK)

    V128 = _round_up(V, 128)
    TM_res = min(256, _round_up(M, 8))
    resident_need = (2 * TM_res * TK * 2      # x tile, bf16, double buffered
                     + 2 * TK * V128 * 2      # weight slab, bf16, double buffered
                     + 2 * TM_res * V128 * 4  # f32 output/accumulator tile
                     + 2 * V128 * 4)          # bias row
    use_resident = (not force_tiled) and resident_need <= int(0.85 * vmem_budget_bytes)

    if use_resident:
        TM, V_pad = TM_res, V128
        M_pad = _round_up(M, TM)
        x_p = _pad_to(x2, (M_pad, H_pad), dtype=compute_dtype)
        w_t = _pad_to(weight.T, (H_pad, V_pad), dtype=compute_dtype)
        b2 = _pad_bias(bias, V_pad)
        vmem_bytes = min(max(int(resident_need * 1.2), 32 << 20), 48 << 20)
        out = _forward_resident(x_p, w_t, b2, TM=TM, TK=TK, vmem_bytes=vmem_bytes)
    else:
        TN = min(512, V128)
        V_pad = _round_up(V, TN)
        TM = min(512, _round_up(M, 8))
        M_pad = _round_up(M, TM)
        x_p = _pad_to(x2, (M_pad, H_pad), dtype=compute_dtype)
        w_t = _pad_to(weight.T, (H_pad, V_pad), dtype=compute_dtype)
        b2 = _pad_bias(bias, V_pad)
        tiled_need = (2 * TM * TK * 2 + 2 * TK * TN * 2 + 2 * TM * TN * 4
                      + 2 * TN * 4 + 4 * TM * 4 + 2 * TM * 4)
        vmem_bytes = min(max(int(tiled_need * 1.5), 32 << 20), 48 << 20)
        out = _forward_tiled(x_p, w_t, b2, TM=TM, TN=TN, TK=TK, vmem_bytes=vmem_bytes)

    return out[:M, :V].reshape(*lead, V)


if __name__ == "__main__":
    key = jax.random.PRNGKey(0)
    k_x, k_w, k_b = jax.random.split(key, 3)

    batch, seq, hidden, vocab_size = 2, 8, 32, 128

    x = jax.random.normal(k_x, (batch, seq, hidden), dtype=jnp.float32)
    bound = 1.0 / jnp.sqrt(hidden)
    weight = jax.random.uniform(k_w, (vocab_size, hidden), jnp.float32,
                                minval=-bound, maxval=bound)
    bias = jax.random.uniform(k_b, (vocab_size,), jnp.float32,
                              minval=-bound, maxval=bound)

    # Reference matching the kernel numerics (bf16 streaming, f32 accumulate).
    xb = x.reshape(-1, hidden).astype(jnp.bfloat16)
    wb = weight.astype(jnp.bfloat16)
    logits_ref = jnp.dot(xb, wb.T, preferred_element_type=jnp.float32) + bias
    ref = jax.nn.log_softmax(logits_ref, axis=-1).reshape(batch, seq, vocab_size)

    out = jax.block_until_ready(masked_log_model(x, weight, bias))
    assert out.shape == (batch, seq, vocab_size)
    assert out.dtype == jnp.float32
    assert jnp.allclose(out, ref, atol=1e-4, rtol=1e-4), \
        float(jnp.max(jnp.abs(out - ref)))

    # Also exercise the N-tiled online/two-pass path used for large vocabularies.
    out_tiled = jax.block_until_ready(
        masked_log_model(x, weight, bias, force_tiled=True))
    assert jnp.allclose(out_tiled, ref, atol=1e-4, rtol=1e-4), \
        float(jnp.max(jnp.abs(out_tiled - ref)))

    # Sanity against a full-f32 reference (bf16 weight streaming costs a little).
    logits_f32 = x.reshape(-1, hidden) @ weight.T + bias
    ref_f32 = jax.nn.log_softmax(logits_f32, axis=-1).reshape(batch, seq, vocab_size)
    assert jnp.allclose(out, ref_f32, atol=5e-2, rtol=5e-2)

    print("KERNEL_OK")
</pallas_src>

<mosaic_0001>
module attributes {stable_mosaic.version = 11 : i64} {
  func.func @_resident_kernel(%arg0: i32, %arg1: i32, %arg2: memref<16x32xbf16, #tpu.memory_space<vmem>>, %arg3: memref<32x128xbf16, #tpu.memory_space<vmem>>, %arg4: memref<1x128xf32, #tpu.memory_space<vmem>>, %arg5: memref<16x128xf32, #tpu.memory_space<vmem>>) attributes {dimension_semantics = [#tpu.dimension_semantics<parallel>, #tpu.dimension_semantics<arbitrary>], iteration_bounds = array<i64: 1, 1>, scalar_prefetch = 0 : i64, scratch_operands = 0 : i64, tpu.core_type = #tpu.core_type<tc>, window_params = [{transform_indices = @transform_0, window_bounds = array<i64: 16, 32>}, {transform_indices = @transform_1, window_bounds = array<i64: 32, 128>}, {pipeline_mode = #tpu.pipeline_mode<synchronous>, transform_indices = @transform_2, window_bounds = array<i64: 1, 128>}, {transform_indices = @transform_3, window_bounds = array<i64: 16, 128>}]} {
    %c0_i32 = arith.constant 0 : i32
    %0 = arith.cmpi eq, %arg1, %c0_i32 : i32
    %1 = arith.extui %0 : i1 to i32
    %c0_i32_0 = arith.constant 0 : i32
    %2 = arith.cmpi ne, %1, %c0_i32_0 : i32
    scf.if %2 {
      %c0_10 = arith.constant 0 : index
      %c0_11 = arith.constant 0 : index
      %12 = vector.load %arg4[%c0_10, %c0_11] : memref<1x128xf32, #tpu.memory_space<vmem>>, vector<1x128xf32>
      %13 = vector.shape_cast %12 : vector<1x128xf32> to vector<1x128xf32>
      %14 = vector.broadcast %13 : vector<1x128xf32> to vector<16x128xf32>
      %c0_12 = arith.constant 0 : index
      %c0_13 = arith.constant 0 : index
      %15 = vector.load %arg5[%c0_12, %c0_13] : memref<16x128xf32, #tpu.memory_space<vmem>>, vector<16x128xf32>
      tpu.vector_store %arg5[%c0_12, %c0_13], %14 {strides = array<i32>} : memref<16x128xf32, #tpu.memory_space<vmem>>, vector<16x128xf32>,
    } else {
    }
    %c0 = arith.constant 0 : index
    %c0_1 = arith.constant 0 : index
    %3 = vector.load %arg5[%c0, %c0_1] : memref<16x128xf32, #tpu.memory_space<vmem>>, vector<16x128xf32>
    %c0_2 = arith.constant 0 : index
    %c0_3 = arith.constant 0 : index
    %4 = vector.load %arg2[%c0_2, %c0_3] : memref<16x32xbf16, #tpu.memory_space<vmem>>, vector<16x32xbf16>
    %c0_4 = arith.constant 0 : index
    %c0_5 = arith.constant 0 : index
    %5 = vector.load %arg3[%c0_4, %c0_5] : memref<32x128xbf16, #tpu.memory_space<vmem>>, vector<32x128xbf16>
    %cst = arith.constant dense<0.000000e+00> : vector<16x128xf32>
    %6 = tpu.matmul %4, %5, %cst {dimension_numbers = #tpu.dot_dimension_numbers<[1], [0], [0], [1], [0, 0, 1, 1], [], []>} : vector<16x32xbf16>, vector<32x128xbf16>, vector<16x128xf32> -> vector<16x128xf32>
    %7 = arith.addf %3, %6 : vector<16x128xf32>
    %c0_6 = arith.constant 0 : index
    %c0_7 = arith.constant 0 : index
    %8 = vector.load %arg5[%c0_6, %c0_7] : memref<16x128xf32, #tpu.memory_space<vmem>>, vector<16x128xf32>
    tpu.vector_store %arg5[%c0_6, %c0_7], %7 {strides = array<i32>} : memref<16x128xf32, #tpu.memory_space<vmem>>, vector<16x128xf32>,
    %c0_i32_8 = arith.constant 0 : i32
    %9 = arith.cmpi eq, %arg1, %c0_i32_8 : i32
    %10 = arith.extui %9 : i1 to i32
    %c0_i32_9 = arith.constant 0 : i32
    %11 = arith.cmpi ne, %10, %c0_i32_9 : i32
    scf.if %11 {
      %c0_10 = arith.constant 0 : index
      %c0_11 = arith.constant 0 : index
      %12 = vector.load %arg5[%c0_10, %c0_11] : memref<16x128xf32, #tpu.memory_space<vmem>>, vector<16x128xf32>
      %cst_12 = arith.constant dense<0xFF800000> : vector<16xf32>
      %13 = vector.multi_reduction <maximumf>, %12, %cst_12 [1] : vector<16x128xf32> to vector<16xf32>
      %14 = vector.shape_cast %13 : vector<16xf32> to vector<16x1xf32>
      %15 = vector.broadcast %14 : vector<16x1xf32> to vector<16x128xf32>
      %16 = arith.subf %12, %15 : vector<16x128xf32>
      %17 = math.exp %16 : vector<16x128xf32>
      %cst_13 = arith.constant dense<0.000000e+00> : vector<16xf32>
      %18 = vector.multi_reduction <add>, %17, %cst_13 [1] : vector<16x128xf32> to vector<16xf32>
      %19 = vector.shape_cast %18 : vector<16xf32> to vector<16x1xf32>
      %20 = math.log %19 : vector<16x1xf32>
      %21 = vector.broadcast %20 : vector<16x1xf32> to vector<16x128xf32>
      %22 = arith.subf %16, %21 : vector<16x128xf32>
      %c0_14 = arith.constant 0 : index
      %c0_15 = arith.constant 0 : index
      %23 = vector.load %arg5[%c0_14, %c0_15] : memref<16x128xf32, #tpu.memory_space<vmem>>, vector<16x128xf32>
      tpu.vector_store %arg5[%c0_14, %c0_15], %22 {strides = array<i32>} : memref<16x128xf32, #tpu.memory_space<vmem>>, vector<16x128xf32>,
    } else {
    }
    return
  }
  func.func @transform_0(%arg0: i32, %arg1: i32) -> (i32, i32) {
    %c0_i32 = arith.constant 0 : i32
    return %arg0, %arg1 : i32, i32
  }
  func.func @transform_1(%arg0: i32, %arg1: i32) -> (i32, i32) {
    %c0_i32 = arith.constant 0 : i32
    %c0_i32_0 = arith.constant 0 : i32
    return %arg1, %c0_i32 : i32, i32
  }
  func.func @transform_2(%arg0: i32, %arg1: i32) -> (i32, i32) {
    %c0_i32 = arith.constant 0 : i32
    %c0_i32_0 = arith.constant 0 : i32
    %c0_i32_1 = arith.constant 0 : i32
    return %c0_i32, %c0_i32_0 : i32, i32
  }
  func.func @transform_3(%arg0: i32, %arg1: i32) -> (i32, i32) {
    %c0_i32 = arith.constant 0 : i32
    %c0_i32_0 = arith.constant 0 : i32
    return %arg0, %c0_i32 : i32, i32
  }
}

</mosaic_0001>

<bundles_post_ra>
// kernel: tpu_custom_call.1
= control target key start
LH: loop header
LB: loop body
LE: loop exit
PB: predicated region body
PF: predicated region fallthrough
CT: control target
= control target key end

     0   :  { %8 = vsyncpa [#allocation3], 0  ;;  %s352_s0 = inlined_call_operand.hbm [shape: bf16[16,32], index: 0, kind: input, shape index: {}]   ;;  %s353_s1 = inlined_call_operand.hbm [shape: bf16[32,128], index: 1, kind: input, shape index: {}]   ;;  %s354_s2 = inlined_call_operand.vmem [shape: f32[1,128], index: 2, kind: input, shape index: {}]   ;;  %s355_s3 = inlined_call_operand.hbm [shape: f32[16,128], index: 3, kind: output, shape index: {}]  }
   0x1   :  { %9 = vsyncpa [#allocation6], 0 }
   0x2   :  { %10 = vsyncpa [#allocation4], 0  ;;  %s284_s12 = smov [#allocation2]   ;;  %s212_s16 = scalar_lea.hbm %s352_s0, 128 }
   0x3   :  { %s16_s13 = sshll.u32 %s284_s12, 4  ;;  %p213_p0 = scmp.ne.s32.totalorder %s352_s0, %s212_s16  ;;  %s17_s13 = int_to_ptr.vmem [resolvable:$true] %s16_s13 }
   0x4   :  { %p216_p1 = scmp.lt.u32.totalorder %s212_s16, %s352_s0 }
   0x6   :  { %p218_p2 = pnand %p216_p1, %p213_p0 }
   0x8   :  { %221 = shalt.err (!%p218_p2)
}
   0x9   :  { %s222_s21 = scalar_lea.vmem %s17_s13, 128  ;;  %p227_p4 = scmp.lt.s32.totalorder %s17_s13, %s17_s13 }
   0xa   :  { %p223_p3 = scmp.ne.s32.totalorder %s17_s13, %s222_s21  ;;  %p228_p5 = scmp.lt.s32.totalorder %s222_s21, %s222_s21 }
   0xc   :  { %p229_p6 = por %p228_p5, %p227_p4 }
   0xe   :  { %p230_p7 = pnand %p229_p6, %p223_p3 }
  0x10   :  { %233 = shalt.err (!%p230_p7)
}
  0x11   :  { %s285_s22 = smov 64   ;;  %s286_s23 = smov 4  }
  0x12   :  { %22 = dma.hbm_to_vmem [thread:$0]  %s352_s0, 128, %s17_s13, [#allocation3], %s285_s22, %s285_s22, %s286_s23  }
  0x13   :  { %s287_s26 = smov [#allocation5]   ;;  %s234_s30 = scalar_lea.hbm %s353_s1, 256 }
  0x14   :  { %s28_s27 = sshll.u32 %s287_s26, 4  ;;  %p235_p8 = scmp.ne.s32.totalorder %s353_s1, %s234_s30  ;;  %s29_s27 = int_to_ptr.vmem [resolvable:$true] %s28_s27 }
  0x15   :  { %p238_p9 = scmp.lt.u32.totalorder %s234_s30, %s353_s1 }
  0x17   :  { %p240_p10 = pnand %p238_p9, %p235_p8 }
  0x19   :  { %243 = shalt.err (!%p240_p10)
}
  0x1a   :  { %s244_s8 = scalar_lea.vmem %s29_s27, 256  ;;  %p249_p12 = scmp.lt.s32.totalorder %s29_s27, %s29_s27 }
  0x1b   :  { %p245_p11 = scmp.ne.s32.totalorder %s29_s27, %s244_s8  ;;  %p250_p13 = scmp.lt.s32.totalorder %s244_s8, %s244_s8 }
  0x1d   :  { %p251_p0 = por %p250_p13, %p249_p12 }
  0x1f   :  { %p252_p1 = pnand %p251_p0, %p245_p11 }
  0x21   :  { %255 = shalt.err (!%p252_p1)
}
  0x22   :  { %34 = dma.hbm_to_vmem [thread:$0]  %s353_s1, 256, %s29_s27, [#allocation6], %s285_s22, %s285_s22, %s286_s23  }
  0x23   :  { %278 = dma.done.wait [#allocation3], 128  }
  0x24   :  { %279 = vsyncadd [#allocation3], 4294967168 }
  0x25   :  { %280 = dma.done.wait [#allocation6], 256  }
  0x26   :  { %281 = vsyncadd [#allocation6], 4294967040  ;;  %v288_v0 = vmov 0.0   ;;  %vm289_vm0 = vmmov 0   ;;  %v201_v1 = vld [vmem:[#allocation5] sm:$0xff]   ;;  %v202_v2 = vld [vmem:[#allocation5 + $0x8] sm:$0xff]  }
  0x27   :  { %184 = vmatprep.subr.bf16.mxu0 %v288_v0  ;;  %188 = vmatprep.mubr.msk.bf16.mxu0 %vm289_vm0, %v288_v0  ;;  %v203_v3 = vld [vmem:[#allocation2] sm:$0xff]   ;;  %vm82_vm1 = vcmask 261120   ;;  %s290_s1 = smov [#allocation7]  }
  0x28   :  { %185 = vmatpush3.bf16.msra.mxu0 %v201_v1  ;;  %v176_v4 = vld [vmem:[%s354_s2] ss:$0 sm:$0xff]  ;;  %s163_s2 = sshll.u32 %s290_s1, 4  ;;  %s164_s2 = int_to_ptr.vmem [resolvable:$true] %s163_s2 }
  0x29   :  { %186 = vmatprep.subr.bf16.mxu0 %v288_v0  ;;  %s256_s12 = scalar_lea.vmem %s164_s2, 256  ;;  %p261_p3 = scmp.lt.s32.totalorder %s164_s2, %s164_s2 }
  0x2a   :  { %p257_p2 = scmp.ne.s32.totalorder %s164_s2, %s256_s12  ;;  %p262_p4 = scmp.lt.s32.totalorder %s256_s12, %s256_s12 }
  0x2c   :  { %187 = vmatpush3.bf16.msra.mxu0 %v202_v2  ;;  %p263_p5 = por %p262_p4, %p261_p3 }
  0x2e   :  { %p264_p6 = pnand %p263_p5, %p257_p2 }
  0x2f   :  { %189 = vmatmul.mubr.msk.bf16.vlgmr.msra.gmra.mrb[0].mxu0 %vm82_vm1, %v203_v3 }
 0x102   :  { %v120_v5 = vpop.f32.mrb[0].mxu0 }
 0x103   :  { %v127_v6 = vadd.f32 %v176_v4, %v120_v5  ;;  %v190_v7 = vpop.f32.mrb[1].mxu0 }
 0x104   :  { %v123_v8 = vpop.f32.mrb[2].mxu0 }
 0x105   :  { %v191_v9 = vpop.f32.mrb[3].mxu0  ;;  %136 = vmax.xlane.f32.xlu0 %v127_v6  ;;  %v128_v10 = vadd.f32 %v176_v4, %v123_v8 }
 0x109   :  { %138 = vmax.xlane.f32.xlu0 %v128_v10 }
 0x192   :  { %v137_v11 = vpop.xlane.xlu0 %136 }
 0x193   :  { %v140_v12 = vsub.f32 %v127_v6, %v137_v11 }
 0x195   :  { %v142_v13 = vmul.f32 1.442695, %v140_v12 }
 0x196   :  { %v139_v14 = vpop.xlane.xlu0 %138 }
 0x197   :  { %v141_v15 = vsub.f32 %v128_v10, %v139_v14  ;;  %204 = vpow2.f32 %v142_v13 }
 0x199   :  { %v144_v16 = vmul.f32 1.442695, %v141_v15 }
 0x19b   :  { %206 = vpow2.f32 %v144_v16 }
 0x1a1   :  { %v205_v17 = vpop.eup %204 }
 0x1a2   :  { %146 = vadd.xlane.f32.xlu1 %v205_v17 }
 0x1a5   :  { %v207_v18 = vpop.eup %206 }
 0x1a6   :  { %148 = vadd.xlane.f32.xlu1 %v207_v18 }
 0x22f   :  { %v147_v19 = vpop.xlane.xlu1 %146 }
 0x230   :  { %208 = vlog2.f32 %v147_v19 }
 0x233   :  { %v149_v20 = vpop.xlane.xlu1 %148 }
 0x234   :  { %210 = vlog2.f32 %v149_v20 }
 0x23a   :  { %v209_v21 = vpop.eup %208 }
 0x23b   :  { %v151_v22 = vmul.f32 0.6931472, %v209_v21 }
 0x23d   :  { %v154_v23 = vsub.f32 %v140_v12, %v151_v22 }
 0x23e   :  { %v211_v24 = vpop.eup %210 }
 0x23f   :  { %156 = vst [vmem:[#allocation7] sm:$0xff] %v154_v23  ;;  %v153_v25 = vmul.f32 0.6931472, %v211_v24 }
 0x241   :  { %v155_v26 = vsub.f32 %v141_v15, %v153_v25 }
 0x243   :  { %157 = vst [vmem:[#allocation7 + $0x8] sm:$0xff] %v155_v26 }
 0x244   :  { %267 = shalt.err (!%p264_p6)
}
 0x245   :  { %s268_s15 = scalar_lea.hbm %s355_s3, 256 }
 0x246   :  { %p269_p7 = scmp.ne.s32.totalorder %s355_s3, %s268_s15  ;;  %p272_p8 = scmp.lt.u32.totalorder %s268_s15, %s355_s3 }
 0x248   :  { %p274_p9 = pnand %p272_p8, %p269_p7 }
 0x24a   :  { %277 = shalt.err (!%p274_p9)
}
 0x24b   :  { %s291_s20 = smov 128   ;;  %s292_s21 = smov 8  }
 0x24c   :  { %169 = dma.vmem_to_hbm [thread:$0]  %s164_s2, 256, %s355_s3, [#allocation4], %s291_s20, %s291_s20, %s292_s21  }
 0x24d   :  { %282 = dma.done.wait [#allocation4], 256  }
 0x24e   :  { %283 = vsyncadd [#allocation4], 4294967040 }
 0x24f   :  { %173 = vsyncpa [#allocation3], 1 }
 0x250   :  { %174 = vsyncpa [#allocation6], 1 }
 0x251   :  { %175 = vsyncpa [#allocation4], 1 }

</bundles_post_ra>
